<compile_context>
chip_gen: v5e
topology: v5e:2x2
jax: 0.10.0
libtpu: 0.0.40
codegen_flags: <defaults>
</compile_context>

<pallas_src>
import jax
import jax.numpy as jnp
from jax.experimental import pallas as pl
from jax.experimental.pallas import tpu as pltpu


def _round_up(x: int, m: int) -> int:
    return ((x + m - 1) // m) * m


def linear_svm_kernel(w_ref, b_ref, xt_ref, o_ref):
    # w_ref: SMEM (2,) f32, b_ref: SMEM (1,) f32.
    # xt_ref: VMEM (2, TR, 128) f32 -- feature axis leading, batch dense over
    #         sublanes (TR) x lanes (128).
    # o_ref : VMEM (TR, 128) f32   -- sublane- and lane-dense output tile.
    w0 = w_ref[0]
    w1 = w_ref[1]
    b = b_ref[0]
    x0 = xt_ref[0]                       # (TR, 128), full dense vregs
    x1 = xt_ref[1]                       # (TR, 128)
    # Pure VPU: 2 vmul + 2 vadd per vreg; no MXU, no cross-lane traffic.
    o_ref[...] = x0 * w0 + x1 * w1 + b


def linear_svm_forward(x, weight, bias, *, block_rows=4096):
    """nn.Linear(2, 1) forward: x (N, 2) -> x @ weight.T + bias, shape (N, 1)."""
    n = x.shape[0]
    orig_dtype = x.dtype

    # Pad the batch only to one lane row (128), never to a tile multiple.
    n128 = _round_up(max(n, 1), 128)
    rows = n128 // 128                                  # rows of 128 samples
    tr = rows if rows <= block_rows else block_rows     # block_rows % 8 == 0
    grid = (pl.cdiv(rows, tr),)                         # ragged tail is masked

    # Single fused wrapper pass: cast + transpose + pad-to-128 + reshape.
    # (A feature-major producer could hand us (2, rows, 128) directly.)
    xt = jnp.pad(x.astype(jnp.float32).T, ((0, 0), (0, n128 - n)))
    xt = xt.reshape(2, rows, 128)
    w_flat = weight.reshape(2).astype(jnp.float32)
    b_flat = bias.reshape(1).astype(jnp.float32)

    out = pl.pallas_call(
        linear_svm_kernel,
        out_shape=jax.ShapeDtypeStruct((rows, 128), jnp.float32),
        grid=grid,
        in_specs=[
            pl.BlockSpec(memory_space=pltpu.MemorySpace.SMEM),   # weight scalars
            pl.BlockSpec(memory_space=pltpu.MemorySpace.SMEM),   # bias scalar
            pl.BlockSpec((2, tr, 128), lambda i: (0, i, 0)),     # x tile (dense)
        ],
        out_specs=pl.BlockSpec((tr, 128), lambda i: (i, 0)),     # y tile (dense)
        compiler_params=pltpu.CompilerParams(
            dimension_semantics=("parallel",),        # megacore split on v7x
            vmem_limit_bytes=32 * 1024 * 1024,        # safe on v5e/v6e/v7x
        ),
        cost_estimate=pl.CostEstimate(
            flops=4 * rows * 128,
            transcendentals=0,
            bytes_accessed=12 * rows * 128,
        ),
    )(w_flat, b_flat, xt)

    # TODO(synk): if the consumer tolerates the lane-dense (rows, 128) slab,
    # return `out` directly and drop this reshape/slice pass.
    return out.reshape(n128)[:n].reshape(n, 1).astype(orig_dtype)


if __name__ == "__main__":
    key = jax.random.PRNGKey(0)
    kx, kw, kb = jax.random.split(key, 3)

    # nn.Linear(2, 1): weight (1, 2), bias (1,), init ~ U(-1/sqrt(2), 1/sqrt(2)).
    bound = 1.0 / jnp.sqrt(2.0)
    weight = jax.random.uniform(kw, (1, 2), jnp.float32, -bound, bound)
    bias = jax.random.uniform(kb, (1,), jnp.float32, -bound, bound)

    # Small example input: batch of 8 two-dimensional points.
    x = jax.random.normal(kx, (8, 2), jnp.float32)
    out = jax.block_until_ready(linear_svm_forward(x, weight, bias))

    ref = x @ weight.T + bias
    assert out.shape == (8, 1)
    assert jnp.allclose(out, ref, atol=1e-5, rtol=1e-5)

    # Larger batch: multiple pipeline steps + ragged last block
    # (rows = 2344 = 4*512 + 296 with block_rows=512).
    x_big = jax.random.normal(kx, (300_000, 2), jnp.float32)
    out_big = jax.block_until_ready(
        linear_svm_forward(x_big, weight, bias, block_rows=512)
    )
    ref_big = x_big @ weight.T + bias
    assert out_big.shape == (300_000, 1)
    assert jnp.allclose(out_big, ref_big, atol=1e-5, rtol=1e-5)

    print("KERNEL_OK")
</pallas_src>

<mosaic_0001>
module attributes {stable_mosaic.version = 11 : i64} {
  func.func @linear_svm_kernel(%arg0: i32, %arg1: memref<2xf32, #tpu.memory_space<smem>>, %arg2: memref<1xf32, #tpu.memory_space<smem>>, %arg3: memref<2x1x128xf32, #tpu.memory_space<vmem>>, %arg4: memref<1x128xf32, #tpu.memory_space<vmem>>) attributes {dimension_semantics = [#tpu.dimension_semantics<parallel>], iteration_bounds = array<i64: 1>, scalar_prefetch = 0 : i64, scratch_operands = 0 : i64, tpu.core_type = #tpu.core_type<tc>, window_params = [{transform_indices = @transform_0, window_bounds = array<i64: 2>}, {transform_indices = @transform_1, window_bounds = array<i64: 1>}, {transform_indices = @transform_2, window_bounds = array<i64: 2, 1, 128>}, {transform_indices = @transform_3, window_bounds = array<i64: 1, 128>}]} {
    %c0 = arith.constant 0 : index
    %0 = memref.load %arg1[%c0] : memref<2xf32, #tpu.memory_space<smem>>
    %c1 = arith.constant 1 : index
    %1 = memref.load %arg1[%c1] : memref<2xf32, #tpu.memory_space<smem>>
    %c0_0 = arith.constant 0 : index
    %2 = memref.load %arg2[%c0_0] : memref<1xf32, #tpu.memory_space<smem>>
    %c0_1 = arith.constant 0 : index
    %c0_2 = arith.constant 0 : index
    %c0_3 = arith.constant 0 : index
    %3 = vector.load %arg3[%c0_1, %c0_2, %c0_3] : memref<2x1x128xf32, #tpu.memory_space<vmem>>, vector<1x1x128xf32>
    %4 = vector.shape_cast %3 : vector<1x1x128xf32> to vector<1x128xf32>
    %c1_4 = arith.constant 1 : index
    %c0_5 = arith.constant 0 : index
    %c0_6 = arith.constant 0 : index
    %5 = vector.load %arg3[%c1_4, %c0_5, %c0_6] : memref<2x1x128xf32, #tpu.memory_space<vmem>>, vector<1x1x128xf32>
    %6 = vector.shape_cast %5 : vector<1x1x128xf32> to vector<1x128xf32>
    %7 = vector.broadcast %0 : f32 to vector<1x128xf32>
    %8 = arith.mulf %4, %7 : vector<1x128xf32>
    %9 = vector.broadcast %1 : f32 to vector<1x128xf32>
    %10 = arith.mulf %6, %9 : vector<1x128xf32>
    %11 = arith.addf %8, %10 : vector<1x128xf32>
    %12 = vector.broadcast %2 : f32 to vector<1x128xf32>
    %13 = arith.addf %11, %12 : vector<1x128xf32>
    %c0_7 = arith.constant 0 : index
    %c0_8 = arith.constant 0 : index
    %14 = vector.load %arg4[%c0_7, %c0_8] : memref<1x128xf32, #tpu.memory_space<vmem>>, vector<1x128xf32>
    tpu.vector_store %arg4[%c0_7, %c0_8], %13 {strides = array<i32>} : memref<1x128xf32, #tpu.memory_space<vmem>>, vector<1x128xf32>,
    return
  }
  func.func @transform_0(%arg0: i32) -> i32 {
    %c0_i32 = arith.constant 0 : i32
    %c0_i32_0 = arith.constant 0 : i32
    return %c0_i32 : i32
  }
  func.func @transform_1(%arg0: i32) -> i32 {
    %c0_i32 = arith.constant 0 : i32
    %c0_i32_0 = arith.constant 0 : i32
    return %c0_i32 : i32
  }
  func.func @transform_2(%arg0: i32) -> (i32, i32, i32) {
    %c0_i32 = arith.constant 0 : i32
    %c0_i32_0 = arith.constant 0 : i32
    %c0_i32_1 = arith.constant 0 : i32
    return %c0_i32, %arg0, %c0_i32_0 : i32, i32, i32
  }
  func.func @transform_3(%arg0: i32) -> (i32, i32) {
    %c0_i32 = arith.constant 0 : i32
    %c0_i32_0 = arith.constant 0 : i32
    return %arg0, %c0_i32 : i32, i32
  }
}

</mosaic_0001>

<bundles_post_ra>
// kernel: tpu_custom_call.1
= control target key start
LH: loop header
LB: loop body
LE: loop exit
PB: predicated region body
PF: predicated region fallthrough
CT: control target
= control target key end

     0   :  { %9 = vsyncpa [#allocation5], 0  ;;  %s141_s0 = inlined_call_operand.hbm [shape: f32[2], index: 0, kind: input, shape index: {}]   ;;  %s142_s1 = inlined_call_operand.<no memory space> [shape: f32[1], index: 1, kind: input, shape index: {}]   ;;  %s143_s2 = inlined_call_operand.vmem [shape: f32[2,1,128], index: 2, kind: input, shape index: {}]   ;;  %s144_s3 = inlined_call_operand.hbm [shape: f32[1,128], index: 3, kind: output, shape index: {}]  }
   0x1   :  { %10 = vsyncpa [#allocation4], 0  ;;  %s16_s14 = sshll.u32 %s141_s0, 4  ;;  %s104_s15 = smov [#allocation3]   ;;  %s17_s14 = int_to_ptr.hbm [resolvable:$true] %s16_s14 }
   0x2   :  { %19 = dma.hbm_to_smem %s17_s14, 16, %s104_s15, [#allocation5]  }
   0x3   :  { %100 = dma.done.wait [#allocation5], 16  }
   0x4   :  { %101 = vsyncadd [#allocation5], 4294967280 }
   0x5   :  { %28 = sfence }
   0x6   :  { %s29_s16 = sld [smem:[#allocation3]]  ;;  %v32_v0 = vld [vmem:[%s143_s2] sm:$0x1]  ;;  %v61_v1 = vld [vmem:[%s143_s2 + $0x1] sm:$0x1]  ;;  %v40_v6 = vstv %s142_s1  ;;  %s105_s23 = smov [#allocation6]  }
   0x7   :  { %s60_s17 = sld [smem:[#allocation3 + $0x1]]  ;;  %s48_s24 = sshll.u32 %s105_s23, 4  ;;  %s49_s24 = int_to_ptr.vmem [resolvable:$true] %s48_s24 }
   0x8   :  { %s50_s27 = sshll.u32 %s144_s3, 4  ;;  %s51_s27 = int_to_ptr.hbm [resolvable:$true] %s50_s27 }
   0xc   :  { %v35_v2 = vstv %s29_s16 }
   0xd   :  { %v36_v3 = vmul.f32 %v35_v2, %v32_v0  ;;  %v37_v4 = vstv %s60_s17 }
   0xe   :  { %v38_v5 = vmul.f32 %v61_v1, %v37_v4 }
  0x10   :  { %v39_v7 = vadd.f32 %v38_v5, %v36_v3 }
  0x12   :  { %v41_v8 = vadd.f32 %v40_v6, %v39_v7 }
  0x14   :  { %42 = vst [vmem:[#allocation6] sm:$0x1] %v41_v8 }
  0x15   :  { %53 = dma.vmem_to_hbm [thread:$0]  %s49_s24, 16, %s51_s27, [#allocation4]  }
  0x16   :  { %102 = dma.done.wait [#allocation4], 16  }
  0x17   :  { %103 = vsyncadd [#allocation4], 4294967280 }
  0x18   :  { %58 = vsyncpa [#allocation4], 1 }
  0x19   :  { %59 = vsyncpa [#allocation5], 1 }

</bundles_post_ra>
